<compile_context>
chip_gen: v5e
topology: v5e:2x2
jax: 0.10.0
libtpu: 0.0.40
codegen_flags: <defaults>
</compile_context>

<pallas_src>
import functools

import jax
import jax.numpy as jnp
from jax.experimental import pallas as pl
from jax.experimental.pallas import tpu as pltpu

BN_EPS = 1e-5
LEAKY_SLOPE = 0.01            # nn.LeakyReLU() default
LANE = 128
_ROW_TILES = (512, 384, 256, 128)


# ----------------------------- helpers ---------------------------------------


def _round_up(x, m):
    return ((x + m - 1) // m) * m


def _vmem_limit_bytes():
    """Generation-aware scoped-VMEM limit (leave ~25% physical headroom)."""
    cap = None
    try:
        info = pltpu.get_tpu_info()
        cap = getattr(info, "vmem_capacity_bytes", None)
    except Exception:
        cap = None
    if not cap:
        cap = 64 * 1024 * 1024          # conservative (v7x-sized) fallback
    return int(min((int(cap) * 3) // 4, 100 * 1024 * 1024))


def _pick_row_tile(n_pad, bytes_per_row, fixed_bytes, budget, cap=None):
    """Largest row tile (multiple of 128 dividing n_pad) that fits the budget."""
    cap = cap or n_pad
    for t in _ROW_TILES:
        if t > cap or n_pad % t:
            continue
        if fixed_bytes + t * bytes_per_row <= budget:
            return t
    return 128


def _pick_agg_tiles(n_pad, feat_pad, budget, cap=None):
    """(row_tile, k_tile) for an Â @ Y aggregation.

    Prefer a fully VMEM-resident feature matrix (k_tile == n_pad): Â is then
    read exactly once and Y/Z is DMA'd once for the whole kernel (HBM lower
    bound).  Otherwise stream 512/256/128-deep K tiles.
    """
    cap = cap or n_pad
    k_cands = [kt for kt in (n_pad, 512, 256, 128)
               if kt <= cap and n_pad % kt == 0]
    r_cands = [t for t in _ROW_TILES if t <= cap and n_pad % t == 0]
    if not k_cands:
        k_cands = [128]
    if not r_cands:
        r_cands = [128]
    for kt in k_cands:
        for tm in r_cands:
            need = (2 * tm * kt * 2            # double-buffered Â tile (bf16)
                    + 2 * kt * feat_pad * 2    # Y / Z tile (bf16)
                    + 2 * tm * feat_pad * 4    # output block (f32 worst case)
                    + tm * feat_pad * 4        # f32 scratch accumulator
                    + 8 * feat_pad * 4)        # bias / stats / scale / shift
            if need <= budget:
                return tm, kt
    return r_cands[-1], k_cands[-1]


# ----------------------------- kernels ----------------------------------------


def _fused_gnn_kernel(n_valid, adj_ref, x_ref, w1_ref, b1_ref, gamma_ref,
                      beta_ref, w2_ref, b2_ref, out_ref):
    """Whole GNNEncoder forward in one VMEM-resident kernel (small graphs)."""
    adj = adj_ref[...]                                              # bf16 (N, N)
    y1 = jnp.dot(x_ref[...], w1_ref[...],
                 preferred_element_type=jnp.float32)                # (N, H) f32
    h = jnp.dot(adj, y1.astype(adj.dtype),
                preferred_element_type=jnp.float32) + b1_ref[...]

    # BatchNorm1d (training): batch mean / biased variance over the n_valid
    # real rows only (padded rows are excluded by the mask).
    rows = jax.lax.broadcasted_iota(jnp.int32, (h.shape[0], 1), 0)
    hm = jnp.where(rows < n_valid, h, 0.0)
    inv_n = 1.0 / float(n_valid)
    mean = jnp.sum(hm, axis=0, keepdims=True) * inv_n
    var = jnp.maximum(jnp.sum(hm * hm, axis=0, keepdims=True) * inv_n
                      - mean * mean, 0.0)
    scale = gamma_ref[...] * jax.lax.rsqrt(var + BN_EPS)
    shift = beta_ref[...] - mean * scale

    hn = h * scale + shift
    hn = jnp.where(hn >= 0.0, hn, LEAKY_SLOPE * hn)                 # LeakyReLU
    # Dropout(p=0.0) -> identity.
    z = jnp.dot(hn.astype(w2_ref.dtype), w2_ref[...],
                preferred_element_type=jnp.float32)
    out_ref[...] = jnp.dot(adj, z.astype(adj.dtype),
                           preferred_element_type=jnp.float32) + b2_ref[...]


def _linear_kernel(x_ref, w_ref, y_ref):
    """Y = X @ W (bf16 operands, f32 MXU accumulation, bf16 out)."""
    y_ref[...] = jnp.dot(x_ref[...], w_ref[...],
                         preferred_element_type=jnp.float32).astype(y_ref.dtype)


def _aggregate_stats_kernel(n_valid, tm, adj_ref, y_ref, b_ref,
                            h_ref, stats_ref, acc_ref):
    """h = Â @ Y + b1 (f32 scratch accumulate, bf16 writeback) plus masked
    per-row-tile BatchNorm partial sums (sum, sum of squares)."""
    # program_id / num_programs are read only at the top level of the body
    # (binding them inside a pl.when branch is not lowerable everywhere).
    i = pl.program_id(0)
    k = pl.program_id(1)
    k_last = pl.num_programs(1) - 1
    rows = i * tm + jax.lax.broadcasted_iota(jnp.int32, (tm, 1), 0)

    @pl.when(k == 0)
    def _():
        acc_ref[...] = jnp.zeros_like(acc_ref)

    acc_ref[...] += jnp.dot(adj_ref[...], y_ref[...],
                            preferred_element_type=jnp.float32)

    @pl.when(k == k_last)
    def _():
        h = acc_ref[...] + b_ref[...]
        h_ref[...] = h.astype(h_ref.dtype)
        hm = jnp.where(rows < n_valid, h, 0.0)          # drop padded rows
        s0 = jnp.sum(hm, axis=0, keepdims=True)
        s1 = jnp.sum(hm * hm, axis=0, keepdims=True)
        stats_ref[...] = jnp.concatenate([s0, s1], axis=0)[None]   # (1, 2, H)


def _bn_act_linear_kernel(h_ref, scale_ref, shift_ref, w_ref, z_ref):
    """Z = LeakyReLU(scale * h + shift) @ W2  (BN folded into scale/shift)."""
    hn = h_ref[...].astype(jnp.float32) * scale_ref[...] + shift_ref[...]
    hn = jnp.where(hn >= 0.0, hn, LEAKY_SLOPE * hn)
    z_ref[...] = jnp.dot(hn.astype(w_ref.dtype), w_ref[...],
                         preferred_element_type=jnp.float32).astype(z_ref.dtype)


def _aggregate_kernel(adj_ref, z_ref, b_ref, out_ref):
    """out = Â @ Z + b2 (f32 output block is the resident accumulator)."""
    k = pl.program_id(1)
    k_last = pl.num_programs(1) - 1

    @pl.when(k == 0)
    def _():
        out_ref[...] = jnp.zeros_like(out_ref)

    out_ref[...] += jnp.dot(adj_ref[...], z_ref[...],
                            preferred_element_type=jnp.float32)

    @pl.when(k == k_last)
    def _():
        out_ref[...] += b_ref[...]


# ----------------------------- host-side glue ---------------------------------


def gcn_norm_dense(edge_index, num_nodes):
    """Dense symmetric-normalized adjacency with self loops (PyG gcn_norm)."""
    row, col = edge_index[0], edge_index[1]     # edge e: row = source, col = target
    loop = jnp.arange(num_nodes, dtype=edge_index.dtype)
    row = jnp.concatenate([row, loop])
    col = jnp.concatenate([col, loop])
    ew = jnp.ones(row.shape[0], jnp.float32)
    deg = jnp.zeros((num_nodes,), jnp.float32).at[col].add(ew)
    dinv = jnp.where(deg > 0, 1.0 / jnp.sqrt(deg), 0.0)
    norm = dinv[row] * ew * dinv[col]
    # Â[i, j] accumulates the norm of edge j -> i.
    return jnp.zeros((num_nodes, num_nodes), jnp.float32).at[col, row].add(norm)


def gnn_encoder_forward(x, edge_index, params, *, force_tiled=False,
                        max_tile=None):
    n, fin = x.shape
    hidden = params["w1"].shape[0]
    out_dim = params["w2"].shape[0]

    n_pad = _round_up(n, LANE)
    fin_pad = _round_up(fin, LANE)
    h_pad = _round_up(hidden, LANE)
    o_pad = _round_up(out_dim, LANE)

    # --- plain-JAX glue: Â, padding, transposes, dtype casts ---
    adj = gcn_norm_dense(edge_index, n)
    adj_p = jnp.zeros((n_pad, n_pad), jnp.bfloat16).at[:n, :n].set(
        adj.astype(jnp.bfloat16))
    x_p = jnp.zeros((n_pad, fin_pad), jnp.bfloat16).at[:n, :fin].set(
        x.astype(jnp.bfloat16))
    w1t = jnp.zeros((fin_pad, h_pad), jnp.bfloat16).at[:fin, :hidden].set(
        params["w1"].T.astype(jnp.bfloat16))
    w2t = jnp.zeros((h_pad, o_pad), jnp.bfloat16).at[:hidden, :out_dim].set(
        params["w2"].T.astype(jnp.bfloat16))
    b1 = jnp.zeros((1, h_pad), jnp.float32).at[0, :hidden].set(params["b1"])
    b2 = jnp.zeros((1, o_pad), jnp.float32).at[0, :out_dim].set(params["b2"])
    gamma = jnp.zeros((1, h_pad), jnp.float32).at[0, :hidden].set(params["gamma"])
    beta = jnp.zeros((1, h_pad), jnp.float32).at[0, :hidden].set(params["beta"])

    vmem_limit = _vmem_limit_bytes()
    budget = (vmem_limit * 4) // 5       # headroom for Mosaic internals

    def _cp(sems):
        return pltpu.CompilerParams(dimension_semantics=sems,
                                    vmem_limit_bytes=vmem_limit)

    # ---- small-graph fast path: one fused pallas_call ----
    fused_bytes = (n_pad * n_pad * 2
                   + n_pad * (fin_pad + h_pad + o_pad) * 2
                   + 6 * n_pad * h_pad * 4
                   + 2 * n_pad * o_pad * 4
                   + (fin_pad * h_pad + h_pad * o_pad) * 2)
    if not force_tiled and fused_bytes <= budget // 2:
        out = pl.pallas_call(
            functools.partial(_fused_gnn_kernel, n),
            out_shape=jax.ShapeDtypeStruct((n_pad, o_pad), jnp.float32),
            grid=(1,),
            in_specs=[pl.BlockSpec((n_pad, n_pad), lambda i: (0, 0)),
                      pl.BlockSpec((n_pad, fin_pad), lambda i: (0, 0)),
                      pl.BlockSpec((fin_pad, h_pad), lambda i: (0, 0)),
                      pl.BlockSpec((1, h_pad), lambda i: (0, 0)),
                      pl.BlockSpec((1, h_pad), lambda i: (0, 0)),
                      pl.BlockSpec((1, h_pad), lambda i: (0, 0)),
                      pl.BlockSpec((h_pad, o_pad), lambda i: (0, 0)),
                      pl.BlockSpec((1, o_pad), lambda i: (0, 0))],
            out_specs=pl.BlockSpec((n_pad, o_pad), lambda i: (0, 0)),
            compiler_params=_cp(("arbitrary",)),
        )(adj_p, x_p, w1t, b1, gamma, beta, w2t, b2)
        return out[:n, :out_dim]

    # ---- general tiled path ----

    # K1: Y1 = X @ W1^T  (row tiles; weight resident)
    tm1 = _pick_row_tile(n_pad, (fin_pad + h_pad) * 4,
                         2 * fin_pad * h_pad * 2, budget, cap=max_tile)
    y1 = pl.pallas_call(
        _linear_kernel,
        out_shape=jax.ShapeDtypeStruct((n_pad, h_pad), jnp.bfloat16),
        grid=(n_pad // tm1,),
        in_specs=[pl.BlockSpec((tm1, fin_pad), lambda i: (i, 0)),
                  pl.BlockSpec((fin_pad, h_pad), lambda i: (0, 0))],
        out_specs=pl.BlockSpec((tm1, h_pad), lambda i: (i, 0)),
        compiler_params=_cp(("parallel",)),
    )(x_p, w1t)

    # K2: h = Â @ Y1 + b1  (+ masked per-row-tile BN partial sums)
    tm2, kt2 = _pick_agg_tiles(n_pad, h_pad, budget, cap=max_tile)
    r2 = n_pad // tm2
    h, stats = pl.pallas_call(
        functools.partial(_aggregate_stats_kernel, n, tm2),
        out_shape=(jax.ShapeDtypeStruct((n_pad, h_pad), jnp.bfloat16),
                   jax.ShapeDtypeStruct((r2, 2, h_pad), jnp.float32)),
        grid=(r2, n_pad // kt2),
        in_specs=[pl.BlockSpec((tm2, kt2), lambda i, k: (i, k)),
                  pl.BlockSpec((kt2, h_pad), lambda i, k: (k, 0)),
                  pl.BlockSpec((1, h_pad), lambda i, k: (0, 0))],
        out_specs=(pl.BlockSpec((tm2, h_pad), lambda i, k: (i, 0)),
                   pl.BlockSpec((1, 2, h_pad), lambda i, k: (i, 0, 0))),
        scratch_shapes=[pltpu.VMEM((tm2, h_pad), jnp.float32)],
        compiler_params=_cp(("parallel", "arbitrary")),
    )(adj_p, y1, b1)

    # BN finalize (tiny plain-JAX op): fold mean/var/gamma/beta -> scale/shift.
    ssum = jnp.sum(stats[:, 0, :], axis=0, keepdims=True)
    ssq = jnp.sum(stats[:, 1, :], axis=0, keepdims=True)
    mean = ssum / n
    var = jnp.maximum(ssq / n - mean * mean, 0.0)        # clamp f32 cancellation
    scale = gamma * jax.lax.rsqrt(var + BN_EPS)
    shift = beta - mean * scale

    # K3: Z = LeakyReLU(scale*h + shift) @ W2^T
    tm3 = _pick_row_tile(n_pad, (h_pad + o_pad) * 4,
                         2 * h_pad * o_pad * 2 + 8 * h_pad * 4, budget,
                         cap=max_tile)
    z = pl.pallas_call(
        _bn_act_linear_kernel,
        out_shape=jax.ShapeDtypeStruct((n_pad, o_pad), jnp.bfloat16),
        grid=(n_pad // tm3,),
        in_specs=[pl.BlockSpec((tm3, h_pad), lambda i: (i, 0)),
                  pl.BlockSpec((1, h_pad), lambda i: (0, 0)),
                  pl.BlockSpec((1, h_pad), lambda i: (0, 0)),
                  pl.BlockSpec((h_pad, o_pad), lambda i: (0, 0))],
        out_specs=pl.BlockSpec((tm3, o_pad), lambda i: (i, 0)),
        compiler_params=_cp(("parallel",)),
    )(h, scale, shift, w2t)

    # K4: out = Â @ Z + b2
    tm4, kt4 = _pick_agg_tiles(n_pad, o_pad, budget, cap=max_tile)
    out = pl.pallas_call(
        _aggregate_kernel,
        out_shape=jax.ShapeDtypeStruct((n_pad, o_pad), jnp.float32),
        grid=(n_pad // tm4, n_pad // kt4),
        in_specs=[pl.BlockSpec((tm4, kt4), lambda i, k: (i, k)),
                  pl.BlockSpec((kt4, o_pad), lambda i, k: (k, 0)),
                  pl.BlockSpec((1, o_pad), lambda i, k: (0, 0))],
        out_specs=pl.BlockSpec((tm4, o_pad), lambda i, k: (i, 0)),
        compiler_params=_cp(("parallel", "arbitrary")),
    )(adj_p, z, b2)

    return out[:n, :out_dim]


def reference_forward(x, edge_index, params):
    """Pure-JAX f32 reference of the same forward (sanity check)."""
    adj = gcn_norm_dense(edge_index, x.shape[0])
    h = adj @ (x @ params["w1"].T) + params["b1"]
    mean = jnp.mean(h, axis=0)
    var = jnp.mean((h - mean) ** 2, axis=0)
    h = (h - mean) * jax.lax.rsqrt(var + BN_EPS) * params["gamma"] + params["beta"]
    h = jnp.where(h >= 0.0, h, LEAKY_SLOPE * h)
    return adj @ (h @ params["w2"].T) + params["b2"]


def init_params(key, input_dim, hidden_dim, output_dim):
    k1, k2, k3, k4, k5, k6 = jax.random.split(key, 6)

    def glorot(k, fan_out, fan_in):
        limit = jnp.sqrt(6.0 / (fan_in + fan_out))
        return jax.random.uniform(k, (fan_out, fan_in), jnp.float32, -limit, limit)

    return {
        "w1": glorot(k1, hidden_dim, input_dim),              # GCNConv.lin.weight
        "b1": 0.1 * jax.random.normal(k2, (hidden_dim,), jnp.float32),
        "gamma": 1.0 + 0.1 * jax.random.normal(k3, (hidden_dim,), jnp.float32),
        "beta": 0.1 * jax.random.normal(k4, (hidden_dim,), jnp.float32),
        "w2": glorot(k5, output_dim, hidden_dim),
        "b2": 0.1 * jax.random.normal(k6, (output_dim,), jnp.float32),
    }


def _ring_edges(n):
    src = jnp.arange(n, dtype=jnp.int32)
    dst = (src + 1) % n
    return jnp.stack(
        [jnp.concatenate([src, dst]), jnp.concatenate([dst, src])], axis=0)


if __name__ == "__main__":
    key = jax.random.PRNGKey(0)
    kx, kp, kx2, kp2 = jax.random.split(key, 4)

    # ---- case 1: tiny graph -> fused single-kernel fast path ----
    N, INPUT_DIM, HIDDEN_DIM, OUTPUT_DIM = 8, 16, 32, 8
    x = jax.random.normal(kx, (N, INPUT_DIM), jnp.float32)
    edge_index = _ring_edges(N)                         # [2, 2N]
    params = init_params(kp, INPUT_DIM, HIDDEN_DIM, OUTPUT_DIM)

    node_emb = gnn_encoder_forward(x, edge_index, params)
    jax.block_until_ready(node_emb)
    assert node_emb.shape == (N, OUTPUT_DIM)
    ref = reference_forward(x, edge_index, params)
    err1 = float(jnp.max(jnp.abs(node_emb - ref)))
    assert err1 < 0.25, f"fused path max abs error vs f32 reference: {err1}"

    # ---- case 2: larger graph forced through the tiled multi-kernel path
    # with 128-tiles so the (row x reduction) grids take several steps ----
    N2, IN2, HID2, OUT2 = 200, 48, 64, 24
    x2 = jax.random.normal(kx2, (N2, IN2), jnp.float32)
    edge_index2 = _ring_edges(N2)
    params2 = init_params(kp2, IN2, HID2, OUT2)

    out2 = gnn_encoder_forward(x2, edge_index2, params2,
                               force_tiled=True, max_tile=128)
    jax.block_until_ready(out2)
    assert out2.shape == (N2, OUT2)
    ref2 = reference_forward(x2, edge_index2, params2)
    err2 = float(jnp.max(jnp.abs(out2 - ref2)))
    assert err2 < 0.25, f"tiled path max abs error vs f32 reference: {err2}"

    print("KERNEL_OK")
</pallas_src>

<mosaic_0001>
module attributes {stable_mosaic.version = 11 : i64} {
  func.func @_fused_gnn_kernel(%arg0: i32, %arg1: memref<128x128xbf16, #tpu.memory_space<vmem>>, %arg2: memref<128x128xbf16, #tpu.memory_space<vmem>>, %arg3: memref<128x128xbf16, #tpu.memory_space<vmem>>, %arg4: memref<1x128xf32, #tpu.memory_space<vmem>>, %arg5: memref<1x128xf32, #tpu.memory_space<vmem>>, %arg6: memref<1x128xf32, #tpu.memory_space<vmem>>, %arg7: memref<128x128xbf16, #tpu.memory_space<vmem>>, %arg8: memref<1x128xf32, #tpu.memory_space<vmem>>, %arg9: memref<128x128xf32, #tpu.memory_space<vmem>>) attributes {dimension_semantics = [#tpu.dimension_semantics<arbitrary>], iteration_bounds = array<i64: 1>, scalar_prefetch = 0 : i64, scratch_operands = 0 : i64, tpu.core_type = #tpu.core_type<tc>, window_params = [{pipeline_mode = #tpu.pipeline_mode<synchronous>, transform_indices = @transform_0, window_bounds = array<i64: 128, 128>}, {pipeline_mode = #tpu.pipeline_mode<synchronous>, transform_indices = @transform_1, window_bounds = array<i64: 128, 128>}, {pipeline_mode = #tpu.pipeline_mode<synchronous>, transform_indices = @transform_2, window_bounds = array<i64: 128, 128>}, {pipeline_mode = #tpu.pipeline_mode<synchronous>, transform_indices = @transform_3, window_bounds = array<i64: 1, 128>}, {pipeline_mode = #tpu.pipeline_mode<synchronous>, transform_indices = @transform_4, window_bounds = array<i64: 1, 128>}, {pipeline_mode = #tpu.pipeline_mode<synchronous>, transform_indices = @transform_5, window_bounds = array<i64: 1, 128>}, {pipeline_mode = #tpu.pipeline_mode<synchronous>, transform_indices = @transform_6, window_bounds = array<i64: 128, 128>}, {pipeline_mode = #tpu.pipeline_mode<synchronous>, transform_indices = @transform_7, window_bounds = array<i64: 1, 128>}, {pipeline_mode = #tpu.pipeline_mode<synchronous>, transform_indices = @transform_8, window_bounds = array<i64: 128, 128>}]} {
    %c0 = arith.constant 0 : index
    %c0_0 = arith.constant 0 : index
    %0 = vector.load %arg1[%c0, %c0_0] : memref<128x128xbf16, #tpu.memory_space<vmem>>, vector<128x128xbf16>
    %c0_1 = arith.constant 0 : index
    %c0_2 = arith.constant 0 : index
    %1 = vector.load %arg2[%c0_1, %c0_2] : memref<128x128xbf16, #tpu.memory_space<vmem>>, vector<128x128xbf16>
    %c0_3 = arith.constant 0 : index
    %c0_4 = arith.constant 0 : index
    %2 = vector.load %arg3[%c0_3, %c0_4] : memref<128x128xbf16, #tpu.memory_space<vmem>>, vector<128x128xbf16>
    %cst = arith.constant dense<0.000000e+00> : vector<128x128xf32>
    %3 = tpu.matmul %1, %2, %cst {dimension_numbers = #tpu.dot_dimension_numbers<[1], [0], [0], [1], [0, 0, 1, 1], [], []>} : vector<128x128xbf16>, vector<128x128xbf16>, vector<128x128xf32> -> vector<128x128xf32>
    %4 = arith.truncf %3 : vector<128x128xf32> to vector<128x128xbf16>
    %cst_5 = arith.constant dense<0.000000e+00> : vector<128x128xf32>
    %5 = tpu.matmul %0, %4, %cst_5 {dimension_numbers = #tpu.dot_dimension_numbers<[1], [0], [0], [1], [0, 0, 1, 1], [], []>} : vector<128x128xbf16>, vector<128x128xbf16>, vector<128x128xf32> -> vector<128x128xf32>
    %c0_6 = arith.constant 0 : index
    %c0_7 = arith.constant 0 : index
    %6 = vector.load %arg4[%c0_6, %c0_7] : memref<1x128xf32, #tpu.memory_space<vmem>>, vector<1x128xf32>
    %7 = vector.broadcast %6 : vector<1x128xf32> to vector<128x128xf32>
    %8 = arith.addf %5, %7 : vector<128x128xf32>
    %9 = tpu.iota {dimensions = array<i32: 0>} : vector<128x1xi32>
    %c8_i32 = arith.constant 8 : i32
    %10 = vector.broadcast %c8_i32 : i32 to vector<128x1xi32>
    %11 = arith.cmpi slt, %9, %10 : vector<128x1xi32>
    %cst_8 = arith.constant 0.000000e+00 : f32
    %12 = vector.shape_cast %11 : vector<128x1xi1> to vector<128x1xi1>
    %13 = vector.broadcast %12 : vector<128x1xi1> to vector<128x128xi1>
    %14 = vector.broadcast %cst_8 : f32 to vector<128x128xf32>
    %15 = arith.select %13, %8, %14 : vector<128x128xi1>, vector<128x128xf32>
    %cst_9 = arith.constant dense<0.000000e+00> : vector<128xf32>
    %16 = vector.multi_reduction <add>, %15, %cst_9 [0] : vector<128x128xf32> to vector<128xf32>
    %17 = vector.shape_cast %16 : vector<128xf32> to vector<1x128xf32>
    %cst_10 = arith.constant 1.250000e-01 : f32
    %18 = vector.broadcast %cst_10 : f32 to vector<1x128xf32>
    %19 = arith.mulf %17, %18 : vector<1x128xf32>
    %20 = arith.mulf %15, %15 : vector<128x128xf32>
    %cst_11 = arith.constant dense<0.000000e+00> : vector<128xf32>
    %21 = vector.multi_reduction <add>, %20, %cst_11 [0] : vector<128x128xf32> to vector<128xf32>
    %22 = vector.shape_cast %21 : vector<128xf32> to vector<1x128xf32>
    %cst_12 = arith.constant 1.250000e-01 : f32
    %23 = vector.broadcast %cst_12 : f32 to vector<1x128xf32>
    %24 = arith.mulf %22, %23 : vector<1x128xf32>
    %25 = arith.mulf %19, %19 : vector<1x128xf32>
    %26 = arith.subf %24, %25 : vector<1x128xf32>
    %cst_13 = arith.constant 0.000000e+00 : f32
    %27 = vector.broadcast %cst_13 : f32 to vector<1x128xf32>
    %28 = arith.maximumf %26, %27 : vector<1x128xf32>
    %c0_14 = arith.constant 0 : index
    %c0_15 = arith.constant 0 : index
    %29 = vector.load %arg5[%c0_14, %c0_15] : memref<1x128xf32, #tpu.memory_space<vmem>>, vector<1x128xf32>
    %cst_16 = arith.constant 9.99999974E-6 : f32
    %30 = vector.broadcast %cst_16 : f32 to vector<1x128xf32>
    %31 = arith.addf %28, %30 : vector<1x128xf32>
    %32 = math.rsqrt %31 : vector<1x128xf32>
    %33 = arith.mulf %29, %32 : vector<1x128xf32>
    %c0_17 = arith.constant 0 : index
    %c0_18 = arith.constant 0 : index
    %34 = vector.load %arg6[%c0_17, %c0_18] : memref<1x128xf32, #tpu.memory_space<vmem>>, vector<1x128xf32>
    %35 = arith.mulf %19, %33 : vector<1x128xf32>
    %36 = arith.subf %34, %35 : vector<1x128xf32>
    %37 = vector.broadcast %33 : vector<1x128xf32> to vector<128x128xf32>
    %38 = arith.mulf %8, %37 : vector<128x128xf32>
    %39 = vector.broadcast %36 : vector<1x128xf32> to vector<128x128xf32>
    %40 = arith.addf %38, %39 : vector<128x128xf32>
    %cst_19 = arith.constant 0.000000e+00 : f32
    %41 = vector.broadcast %cst_19 : f32 to vector<128x128xf32>
    %42 = arith.cmpf oge, %40, %41 : vector<128x128xf32>
    %cst_20 = arith.constant 0.00999999977 : f32
    %43 = vector.broadcast %cst_20 : f32 to vector<128x128xf32>
    %44 = arith.mulf %43, %40 : vector<128x128xf32>
    %45 = arith.select %42, %40, %44 : vector<128x128xi1>, vector<128x128xf32>
    %46 = arith.truncf %45 : vector<128x128xf32> to vector<128x128xbf16>
    %c0_21 = arith.constant 0 : index
    %c0_22 = arith.constant 0 : index
    %47 = vector.load %arg7[%c0_21, %c0_22] : memref<128x128xbf16, #tpu.memory_space<vmem>>, vector<128x128xbf16>
    %cst_23 = arith.constant dense<0.000000e+00> : vector<128x128xf32>
    %48 = tpu.matmul %46, %47, %cst_23 {dimension_numbers = #tpu.dot_dimension_numbers<[1], [0], [0], [1], [0, 0, 1, 1], [], []>} : vector<128x128xbf16>, vector<128x128xbf16>, vector<128x128xf32> -> vector<128x128xf32>
    %49 = arith.truncf %48 : vector<128x128xf32> to vector<128x128xbf16>
    %cst_24 = arith.constant dense<0.000000e+00> : vector<128x128xf32>
    %50 = tpu.matmul %0, %49, %cst_24 {dimension_numbers = #tpu.dot_dimension_numbers<[1], [0], [0], [1], [0, 0, 1, 1], [], []>} : vector<128x128xbf16>, vector<128x128xbf16>, vector<128x128xf32> -> vector<128x128xf32>
    %c0_25 = arith.constant 0 : index
    %c0_26 = arith.constant 0 : index
    %51 = vector.load %arg8[%c0_25, %c0_26] : memref<1x128xf32, #tpu.memory_space<vmem>>, vector<1x128xf32>
    %52 = vector.broadcast %51 : vector<1x128xf32> to vector<128x128xf32>
    %53 = arith.addf %50, %52 : vector<128x128xf32>
    %c0_27 = arith.constant 0 : index
    %c0_28 = arith.constant 0 : index
    %54 = vector.load %arg9[%c0_27, %c0_28] : memref<128x128xf32, #tpu.memory_space<vmem>>, vector<128x128xf32>
    tpu.vector_store %arg9[%c0_27, %c0_28], %53 {strides = array<i32>} : memref<128x128xf32, #tpu.memory_space<vmem>>, vector<128x128xf32>,
    return
  }
  func.func @transform_0(%arg0: i32) -> (i32, i32) {
    %c0_i32 = arith.constant 0 : i32
    %c0_i32_0 = arith.constant 0 : i32
    %c0_i32_1 = arith.constant 0 : i32
    return %c0_i32, %c0_i32_0 : i32, i32
  }
  func.func @transform_1(%arg0: i32) -> (i32, i32) {
    %c0_i32 = arith.constant 0 : i32
    %c0_i32_0 = arith.constant 0 : i32
    %c0_i32_1 = arith.constant 0 : i32
    return %c0_i32, %c0_i32_0 : i32, i32
  }
  func.func @transform_2(%arg0: i32) -> (i32, i32) {
    %c0_i32 = arith.constant 0 : i32
    %c0_i32_0 = arith.constant 0 : i32
    %c0_i32_1 = arith.constant 0 : i32
    return %c0_i32, %c0_i32_0 : i32, i32
  }
  func.func @transform_3(%arg0: i32) -> (i32, i32) {
    %c0_i32 = arith.constant 0 : i32
    %c0_i32_0 = arith.constant 0 : i32
    %c0_i32_1 = arith.constant 0 : i32
    return %c0_i32, %c0_i32_0 : i32, i32
  }
  func.func @transform_4(%arg0: i32) -> (i32, i32) {
    %c0_i32 = arith.constant 0 : i32
    %c0_i32_0 = arith.constant 0 : i32
    %c0_i32_1 = arith.constant 0 : i32
    return %c0_i32, %c0_i32_0 : i32, i32
  }
  func.func @transform_5(%arg0: i32) -> (i32, i32) {
    %c0_i32 = arith.constant 0 : i32
    %c0_i32_0 = arith.constant 0 : i32
    %c0_i32_1 = arith.constant 0 : i32
    return %c0_i32, %c0_i32_0 : i32, i32
  }
  func.func @transform_6(%arg0: i32) -> (i32, i32) {
    %c0_i32 = arith.constant 0 : i32
    %c0_i32_0 = arith.constant 0 : i32
    %c0_i32_1 = arith.constant 0 : i32
    return %c0_i32, %c0_i32_0 : i32, i32
  }
  func.func @transform_7(%arg0: i32) -> (i32, i32) {
    %c0_i32 = arith.constant 0 : i32
    %c0_i32_0 = arith.constant 0 : i32
    %c0_i32_1 = arith.constant 0 : i32
    return %c0_i32, %c0_i32_0 : i32, i32
  }
  func.func @transform_8(%arg0: i32) -> (i32, i32) {
    %c0_i32 = arith.constant 0 : i32
    %c0_i32_0 = arith.constant 0 : i32
    %c0_i32_1 = arith.constant 0 : i32
    return %c0_i32, %c0_i32_0 : i32, i32
  }
}

</mosaic_0001>

<bundles_post_ra>
// kernel: tpu_custom_call.1
= control target key start
LH: loop header
LB: loop body
LE: loop exit
PB: predicated region body
PF: predicated region fallthrough
CT: control target
= control target key end

     0   :  { %13 = vsyncpa [#allocation3], 0  ;;  %s1328_s0 = inlined_call_operand.hbm [shape: bf16[128,128], index: 0, kind: input, shape index: {}]   ;;  %s1329_s1 = inlined_call_operand.hbm [shape: bf16[128,128], index: 1, kind: input, shape index: {}]   ;;  %s1330_s2 = inlined_call_operand.hbm [shape: bf16[128,128], index: 2, kind: input, shape index: {}]   ;;  %s1331_s3 = inlined_call_operand.vmem [shape: f32[1,128], index: 3, kind: input, shape index: {}]   ;;  %s1332_s4 = inlined_call_operand.vmem [shape: f32[1,128], index: 4, kind: input, shape index: {}]   ;;  %s1333_s5 = inlined_call_operand.vmem [shape: f32[1,128], index: 5, kind: input, shape index: {}]   ;;  %s1334_s6 = inlined_call_operand.hbm [shape: bf16[128,128], index: 6, kind: input, shape index: {}]   ;;  %s1335_s7 = inlined_call_operand.vmem [shape: f32[1,128], index: 7, kind: input, shape index: {}]   ;;  %s1336_s8 = inlined_call_operand.hbm [shape: f32[128,128], index: 8, kind: output, shape index: {}]  }
   0x1   :  { %14 = vsyncpa [#allocation6], 0 }
   0x2   :  { %15 = vsyncpa [#allocation9], 0 }
   0x3   :  { %16 = vsyncpa [#allocation4], 0  ;;  %s34_s29 = sshll.u32 %s1329_s1, 4  ;;  %s1161_s30 = smov [#allocation5]   ;;  %s35_s29 = int_to_ptr.hbm [resolvable:$true] %s34_s29 }
   0x4   :  { %s36_s9 = sshll.u32 %s1161_s30, 4  ;;  %s21_s12 = sshll.u32 %s1328_s0, 4  ;;  %s37_s9 = int_to_ptr.vmem [resolvable:$true] %s36_s9  ;;  %s22_s12 = int_to_ptr.hbm [resolvable:$true] %s21_s12 }
   0x5   :  { %s1162_s13 = smov 64   ;;  %s1163_s14 = smov 4  }
   0x6   :  { %42 = dma.hbm_to_vmem [thread:$0]  %s35_s29, 1024, %s37_s9, [#allocation6], %s1162_s13, %s1162_s13, %s1163_s14  }
   0x7   :  { %s1164_s15 = smov [#allocation2]   ;;  %s47_s19 = sshll.u32 %s1330_s2, 4  ;;  %s48_s19 = int_to_ptr.hbm [resolvable:$true] %s47_s19 }
   0x8   :  { %s23_s16 = sshll.u32 %s1164_s15, 4  ;;  %s66_s21 = sshll.u32 %s1334_s6, 4  ;;  %s24_s16 = int_to_ptr.vmem [resolvable:$true] %s23_s16  ;;  %s67_s21 = int_to_ptr.hbm [resolvable:$true] %s66_s21 }
   0x9   :  { %29 = dma.hbm_to_vmem [thread:$0]  %s22_s12, 1024, %s24_s16, [#allocation3], %s1162_s13, %s1162_s13, %s1163_s14  }
   0xa   :  { %s1165_s22 = smov [#allocation7]   ;;  %s1166_s0 = smov [#allocation8]  }
   0xb   :  { %s49_s23 = sshll.u32 %s1165_s22, 4  ;;  %s68_s24 = sshll.u32 %s1166_s0, 4  ;;  %s50_s23 = int_to_ptr.vmem [resolvable:$true] %s49_s23  ;;  %s69_s24 = int_to_ptr.vmem [resolvable:$true] %s68_s24 }
   0xc   :  { %55 = dma.hbm_to_vmem [thread:$0]  %s48_s19, 1024, %s50_s23, [#allocation6], %s1162_s13, %s1162_s13, %s1163_s14  }
   0xd   :  { %74 = dma.hbm_to_vmem [thread:$0]  %s67_s21, 1024, %s69_s24, [#allocation9], %s1162_s13, %s1162_s13, %s1163_s14  }
   0xe   :  { %1153 = dma.done.wait [#allocation3], 1024  }
   0xf   :  { %1154 = vsyncadd [#allocation3], 4294966272 }
  0x10   :  { %1155 = dma.done.wait [#allocation6], 2048  }
  0x11   :  { %1156 = vsyncadd [#allocation6], 4294965248 }
  0x12   :  { %1157 = dma.done.wait [#allocation9], 1024  }
  0x13   :  { %1158 = vsyncadd [#allocation9], 4294966272  ;;  %v1011_v0 = vld [vmem:[#allocation7 + $0x38] sm:$0xff]  ;;  %v1010_v1 = vld [vmem:[#allocation7 + $0x30] sm:$0xff]  ;;  %s845_s9 = sshll.u32 %s1336_s8, 4  ;;  %s1168_s10 = smov 128   ;;  %s846_s9 = int_to_ptr.hbm [resolvable:$true] %s845_s9 }
  0x14   :  { %237 = vmatpush.bf16.msra.mxu0 %v1011_v0  ;;  %v1009_v2 = vld [vmem:[#allocation7 + $0x28] sm:$0xff]  ;;  %v1008_v3 = vld [vmem:[#allocation7 + $0x20] sm:$0xff]  ;;  %v1007_v4 = vld [vmem:[#allocation7 + $0x18] sm:$0xff]  ;;  %s1169_s11 = smov 8  }
  0x15   :  { %v1006_v5 = vld [vmem:[#allocation7 + $0x10] sm:$0xff]  ;;  %v1005_v6 = vld [vmem:[#allocation7 + $0x8] sm:$0xff]  ;;  %v1004_v7 = vld [vmem:[#allocation7] sm:$0xff] }
  0x16   :  { %v996_v8 = vld [vmem:[#allocation5] sm:$0xff]  ;;  %v997_v9 = vld [vmem:[#allocation5 + $0x8] sm:$0xff]  ;;  %v998_v10 = vld [vmem:[#allocation5 + $0x10] sm:$0xff] }
  0x17   :  { %v999_v11 = vld [vmem:[#allocation5 + $0x18] sm:$0xff]  ;;  %v1000_v12 = vld [vmem:[#allocation5 + $0x20] sm:$0xff]  ;;  %v1001_v13 = vld [vmem:[#allocation5 + $0x28] sm:$0xff] }
  0x18   :  { %238 = vmatpush.bf16.msra.mxu0 %v1010_v1  ;;  %v1002_v14 = vld [vmem:[#allocation5 + $0x30] sm:$0xff]  ;;  %v1003_v15 = vld [vmem:[#allocation5 + $0x38] sm:$0xff]  ;;  %v1227_v40 = vld [vmem:[#allocation2] sm:$0xff] }
  0x19   :  { %v1230_v41 = vld [vmem:[#allocation2 + $0x8] sm:$0xff]  ;;  %v1233_v42 = vld [vmem:[#allocation2 + $0x10] sm:$0xff]  ;;  %v1236_v43 = vld [vmem:[#allocation2 + $0x18] sm:$0xff] }
  0x1a   :  { %v1239_v44 = vld [vmem:[#allocation2 + $0x20] sm:$0xff]  ;;  %v1242_v45 = vld [vmem:[#allocation2 + $0x28] sm:$0xff]  ;;  %v1245_v46 = vld [vmem:[#allocation2 + $0x30] sm:$0xff] }
  0x1b   :  { %v1248_v47 = vld [vmem:[#allocation2 + $0x38] sm:$0xff]  ;;  %v1254_v49 = vld [vmem:[%s1331_s3] ss:$0 sm:$0xff]  ;;  %v1018_v50 = vld [vmem:[#allocation8 + $0x30] sm:$0xff] }
  0x1c   :  { %239 = vmatpush.bf16.msra.mxu0 %v1009_v2  ;;  %v1019_v48 = vld [vmem:[#allocation8 + $0x38] sm:$0xff]  ;;  %v1017_v53 = vld [vmem:[#allocation8 + $0x28] sm:$0xff]  ;;  %v1016_v58 = vld [vmem:[#allocation8 + $0x20] sm:$0xff] }
  0x1d   :  { %713 = vmatpush.bf16.msra.mxu2 %v1019_v48  ;;  %v1015_v0 = vld [vmem:[#allocation8 + $0x18] sm:$0xff] }
  0x20   :  { %240 = vmatpush.bf16.msra.mxu0 %v1008_v3 }
  0x21   :  { %714 = vmatpush.bf16.msra.mxu2 %v1018_v50 }
  0x24   :  { %241 = vmatpush.bf16.msra.mxu0 %v1007_v4 }
  0x25   :  { %715 = vmatpush.bf16.msra.mxu2 %v1017_v53 }
  0x28   :  { %242 = vmatpush.bf16.msra.mxu0 %v1006_v5  ;;  %v1014_v5 = vld [vmem:[#allocation8 + $0x10] sm:$0xff] }
  0x29   :  { %716 = vmatpush.bf16.msra.mxu2 %v1016_v58 }
  0x2c   :  { %243 = vmatpush.bf16.msra.mxu0 %v1005_v6 }
  0x2d   :  { %717 = vmatpush.bf16.msra.mxu2 %v1015_v0 }
  0x30   :  { %244 = vmatpush.bf16.msra.mxu0 %v1004_v7 }
  0x31   :  { %718 = vmatpush.bf16.msra.mxu2 %v1014_v5 }
  0x33   :  { %245 = vmatmul.bf16.vlgmr.msra.gmra.mxu0 %v996_v8 }
  0x43   :  { %250 = vmatmul.bf16.gmra.mxu0 %v997_v9 }
  0x53   :  { %255 = vmatmul.bf16.gmra.mxu0 %v998_v10 }
  0x63   :  { %260 = vmatmul.bf16.gmra.mxu0 %v999_v11  ;;  %v1013_v11 = vld [vmem:[#allocation8 + $0x8] sm:$0xff] }
  0x64   :  { %719 = vmatpush.bf16.msra.mxu2 %v1013_v11 }
  0x73   :  { %265 = vmatmul.bf16.gmra.mxu0 %v1000_v12 }
  0x83   :  { %270 = vmatmul.bf16.gmra.mxu0 %v1001_v13 }
  0x93   :  { %275 = vmatmul.bf16.gmra.mxu0 %v1002_v14  ;;  %v1012_v14 = vld [vmem:[#allocation8] sm:$0xff] }
  0x94   :  { %720 = vmatpush.bf16.msra.mxu2 %v1012_v14 }
  0xa3   :  { %280 = vmatmul.bf16.gmra.mxu0 %v1003_v15 }
  0xb0   :  { %v246_v16 = vpop.f32.mrf.mxu0 }
  0xb8   :  { %v248_v17 = vpop.f32.mrf.mxu0 }
  0xb9   :  { %v286_v18 = vpack.c.bf16 %v248_v17, %v246_v16 }
  0xc0   :  { %v251_v19 = vpop.f32.mrf.mxu0 }
  0xc8   :  { %v253_v20 = vpop.f32.mrf.mxu0 }
  0xc9   :  { %v287_v21 = vpack.c.bf16 %v253_v20, %v251_v19 }
  0xd0   :  { %v256_v22 = vpop.f32.mrf.mxu0 }
  0xd8   :  { %v258_v23 = vpop.f32.mrf.mxu0 }
  0xd9   :  { %v288_v24 = vpack.c.bf16 %v258_v23, %v256_v22  ;;  %v539_v23 = vld [vmem:[%s1332_s4] sm:$0x1] }
  0xe0   :  { %v261_v25 = vpop.f32.mrf.mxu0 }
  0xe8   :  { %v263_v26 = vpop.f32.mrf.mxu0 }
  0xe9   :  { %v289_v27 = vpack.c.bf16 %v263_v26, %v261_v25 }
  0xf0   :  { %v266_v28 = vpop.f32.mrf.mxu0 }
  0xf8   :  { %v268_v29 = vpop.f32.mrf.mxu0 }
  0xf9   :  { %v290_v39 = vpack.c.bf16 %v268_v29, %v266_v28 }
 0x100   :  { %v271_v30 = vpop.f32.mrf.mxu0 }
 0x108   :  { %v273_v31 = vpop.f32.mrf.mxu0 }
 0x109   :  { %v291_v38 = vpack.c.bf16 %v273_v31, %v271_v30 }
 0x110   :  { %v276_v32 = vpop.f32.mrf.mxu0 }
 0x118   :  { %v278_v33 = vpop.f32.mrf.mxu0 }
 0x119   :  { %v292_v37 = vpack.c.bf16 %v278_v33, %v276_v32 }
 0x120   :  { %v281_v34 = vpop.f32.mrf.mxu0 }
 0x128   :  { %v283_v35 = vpop.f32.mrf.mxu0 }
 0x129   :  { %v293_v36 = vpack.c.bf16 %v283_v35, %v281_v34 }
 0x12b   :  { %346 = vmatpush.bf16.msra.mxu1 %v293_v36 }
 0x12f   :  { %347 = vmatpush.bf16.msra.mxu1 %v292_v37 }
 0x133   :  { %348 = vmatpush.bf16.msra.mxu1 %v291_v38 }
 0x137   :  { %349 = vmatpush.bf16.msra.mxu1 %v290_v39 }
 0x13b   :  { %350 = vmatpush.bf16.msra.mxu1 %v289_v27  ;;  %v552_v27 = vld [vmem:[%s1333_s5] sm:$0x1] }
 0x13f   :  { %351 = vmatpush.bf16.msra.mxu1 %v288_v24 }
 0x143   :  { %352 = vmatpush.bf16.msra.mxu1 %v287_v21 }
 0x147   :  { %353 = vmatpush.bf16.msra.mxu1 %v286_v18 }
 0x14a   :  { %354 = vmatmul.bf16.vlgmr.msra.gmra.mxu1 %v1227_v40 }
 0x15a   :  { %359 = vmatmul.bf16.gmra.mxu1 %v1230_v41 }
 0x16a   :  { %364 = vmatmul.bf16.gmra.mxu1 %v1233_v42 }
 0x17a   :  { %369 = vmatmul.bf16.gmra.mxu1 %v1236_v43 }
 0x18a   :  { %374 = vmatmul.bf16.gmra.mxu1 %v1239_v44 }
 0x19a   :  { %379 = vmatmul.bf16.gmra.mxu1 %v1242_v45 }
 0x1aa   :  { %384 = vmatmul.bf16.gmra.mxu1 %v1245_v46 }
 0x1ba   :  { %389 = vmatmul.bf16.gmra.mxu1 %v1248_v47 }
 0x1c7   :  { %v355_v51 = vpop.f32.mrf.mxu1 }
 0x1c8   :  { %v356_v52 = vadd.f32 %v1254_v49, %v355_v51 }
 0x1ca   :  { %v491_v54 = vrot.slane %v356_v52, 4  ;;  %v498_v55 = vmul.f32 %v356_v52, %v356_v52 }
 0x1cc   :  { %v492_v56 = vadd.f32 %v491_v54, %v356_v52  ;;  %v529_v57 = vrot.slane %v498_v55, 4 }
 0x1ce   :  { %v493_v59 = vrot.slane %v492_v56, 2  ;;  %v530_v60 = vadd.f32 %v529_v57, %v498_v55 }
 0x1cf   :  { %v357_v61 = vpop.f32.mrf.mxu1 }
 0x1d0   :  { %v494_v62 = vadd.f32 %v493_v59, %v492_v56  ;;  %v531_v63 = vrot.slane %v530_v60, 2  ;;  %v358_v31 = vadd.f32 %v1254_v49, %v357_v61 }
 0x1d2   :  { %v495_v1 = vrot.slane %v494_v62, 1  ;;  %v532_v2 = vadd.f32 %v531_v63, %v530_v60 }
 0x1d4   :  { %v496_v3 = vadd.f32 %v495_v1, %v494_v62  ;;  %v533_v4 = vrot.slane %v532_v2, 1 }
 0x1d6   :  { %v497_v6 = vmul.f32 0.125, %v496_v3  ;;  %v534_v7 = vadd.f32 %v533_v4, %v532_v2 }
 0x1d7   :  { %v360_v10 = vpop.f32.mrf.mxu1 }
 0x1d8   :  { %v535_v8 = vmul.f32 0.125, %v534_v7  ;;  %v536_v9 = vmul.f32 %v497_v6, %v497_v6  ;;  %v361_v50 = vadd.f32 %v1254_v49, %v360_v10 }
 0x1da   :  { %v537_v12 = vsub.f32 %v535_v8, %v536_v9 }
 0x1dc   :  { %v538_v13 = vmax.f32 %v537_v12, 0.0 }
 0x1de   :  { %v540_v15 = vadd.f32 1e-05, %v538_v13 }
 0x1df   :  { %v362_v16 = vpop.f32.mrf.mxu1 }
 0x1e0   :  { %1031 = vrsqrt.f32 %v540_v15  ;;  %vm547_vm1 = vweird.f32 %v540_v15  ;;  %v363_v51 = vadd.f32 %v1254_v49, %v362_v16 }
 0x1e6   :  { %v1032_v17 = vpop.eup %1031 }
 0x1e7   :  { %v542_v18 = vmul.f32 %v1032_v17, %v540_v15  ;;  %v365_v21 = vpop.f32.mrf.mxu1  ;;  %vm548_vm0 = vweird.f32 %v1032_v17 }
 0x1e8   :  { %vm549_vm2 = vmor %vm547_vm1, %vm548_vm0  ;;  %v366_v0 = vadd.f32 %v1254_v49, %v365_v21 }
 0x1e9   :  { %v543_v19 = vmul.f32 %v1032_v17, %v542_v18 }
 0x1eb   :  { %v544_v20 = vmul.f32 0.5, %v543_v19 }
 0x1ed   :  { %v545_v22 = vsub.f32 1.5, %v544_v20 }
 0x1ef   :  { %v546_v24 = vmul.f32 %v1032_v17, %v545_v22  ;;  %v367_v32 = vpop.f32.mrf.mxu1 }
 0x1f0   :  { %v368_v1 = vadd.f32 %v1254_v49, %v367_v32 }
 0x1f1   :  { %v550_v25 = vsel %vm549_vm2, %v1032_v17, %v546_v24 }
 0x1f2   :  { %v551_v26 = vmul.f32 %v550_v25, %v539_v23 }
 0x1f4   :  { %v553_v28 = vmul.f32 %v551_v26, %v497_v6  ;;  %v1263_v29 = vperm.slane %v551_v26, 0 }
 0x1f6   :  { %v554_v30 = vsub.f32 %v552_v27, %v553_v28  ;;  %v559_v34 = vmul.f32 %v1263_v29, %v358_v31  ;;  %v558_v35 = vmul.f32 %v1263_v29, %v356_v52  ;;  %v560_v56 = vmul.f32 %v1263_v29, %v361_v50 }
 0x1f7   :  { %v370_v54 = vpop.f32.mrf.mxu1  ;;  %v561_v52 = vmul.f32 %v1263_v29, %v363_v51  ;;  %v562_v3 = vmul.f32 %v1263_v29, %v366_v0  ;;  %v563_v4 = vmul.f32 %v1263_v29, %v368_v1 }
 0x1f8   :  { %v1266_v33 = vperm.slane %v554_v30, 0  ;;  %v371_v14 = vadd.f32 %v1254_v49, %v370_v54 }
 0x1fa   :  { %v578_v36 = vadd.f32 %v1266_v33, %v559_v34  ;;  %v577_v37 = vadd.f32 %v1266_v33, %v558_v35  ;;  %v579_v57 = vadd.f32 %v1266_v33, %v560_v56  ;;  %v580_v58 = vadd.f32 %v1266_v33, %v561_v52 }
 0x1fb   :  { %v581_v6 = vadd.f32 %v1266_v33, %v562_v3  ;;  %v582_v7 = vadd.f32 %v1266_v33, %v563_v4  ;;  %v564_v17 = vmul.f32 %v1263_v29, %v371_v14 }
 0x1fc   :  { %vm594_vm3 = vcmp.ge.f32.partialorder %v578_v36, 0.0  ;;  %v610_v38 = vmul.f32 0.01, %v578_v36  ;;  %vm593_vm4 = vcmp.ge.f32.partialorder %v577_v37, 0.0  ;;  %v609_v39 = vmul.f32 0.01, %v577_v37 }
 0x1fd   :  { %v611_v59 = vmul.f32 0.01, %v579_v57  ;;  %v612_v60 = vmul.f32 0.01, %v580_v58  ;;  %vm595_vm5 = vcmp.ge.f32.partialorder %v579_v57, 0.0  ;;  %vm596_vm6 = vcmp.ge.f32.partialorder %v580_v58, 0.0 }
 0x1fe   :  { %v626_v48 = vsel %vm594_vm3, %v578_v36, %v610_v38  ;;  %v625_v53 = vsel %vm593_vm4, %v577_v37, %v609_v39  ;;  %v613_v8 = vmul.f32 0.01, %v581_v6  ;;  %v614_v9 = vmul.f32 0.01, %v582_v7 }
 0x1ff   :  { %v641_v55 = vpack.c.bf16 %v626_v48, %v625_v53  ;;  %v372_v61 = vpop.f32.mrf.mxu1  ;;  %v627_v62 = vsel %vm595_vm5, %v579_v57, %v611_v59  ;;  %v628_v63 = vsel %vm596_vm6, %v580_v58, %v612_v60  ;;  %vm597_vm7 = vcmp.ge.f32.partialorder %v581_v6, 0.0 }
 0x200   :  { %v642_v2 = vpack.c.bf16 %v628_v63, %v627_v62  ;;  %vm598_vm8 = vcmp.ge.f32.partialorder %v582_v7, 0.0  ;;  %v373_v10 = vadd.f32 %v1254_v49, %v372_v61  ;;  %v629_v11 = vsel %vm597_vm7, %v581_v6, %v613_v8 }
 0x201   :  { %721 = vmatmul.bf16.vlgmr.msra.gmra.mxu2 %v641_v55  ;;  %v630_v12 = vsel %vm598_vm8, %v582_v7, %v614_v9  ;;  %v583_v19 = vadd.f32 %v1266_v33, %v564_v17 }
 0x202   :  { %v643_v15 = vpack.c.bf16 %v630_v12, %v629_v11  ;;  %v565_v16 = vmul.f32 %v1263_v29, %v373_v10 }
 0x203   :  { %v615_v22 = vmul.f32 0.01, %v583_v19  ;;  %vm599_vm10 = vcmp.ge.f32.partialorder %v583_v19, 0.0 }
 0x204   :  { %v584_v18 = vadd.f32 %v1266_v33, %v565_v16 }
 0x205   :  { %v631_v26 = vsel %vm599_vm10, %v583_v19, %v615_v22 }
 0x206   :  { %v616_v21 = vmul.f32 0.01, %v584_v18  ;;  %vm600_vm9 = vcmp.ge.f32.partialorder %v584_v18, 0.0 }
 0x207   :  { %v375_v5 = vpop.f32.mrf.mxu1 }
 0x208   :  { %v632_v24 = vsel %vm600_vm9, %v584_v18, %v616_v21  ;;  %v376_v25 = vadd.f32 %v1254_v49, %v375_v5 }
 0x209   :  { %v644_v27 = vpack.c.bf16 %v632_v24, %v631_v26 }
 0x20a   :  { %v566_v31 = vmul.f32 %v1263_v29, %v376_v25 }
 0x20c   :  { %v585_v34 = vadd.f32 %v1266_v33, %v566_v31 }
 0x20e   :  { %v617_v36 = vmul.f32 0.01, %v585_v34  ;;  %vm601_vm12 = vcmp.ge.f32.partialorder %v585_v34, 0.0 }
 0x20f   :  { %v377_v13 = vpop.f32.mrf.mxu1 }
 0x210   :  { %v378_v23 = vadd.f32 %v1254_v49, %v377_v13  ;;  %v633_v50 = vsel %vm601_vm12, %v585_v34, %v617_v36 }
 0x211   :  { %726 = vmatmul.bf16.gmra.mxu2 %v642_v2 }
 0x212   :  { %v567_v28 = vmul.f32 %v1263_v29, %v378_v23 }
 0x214   :  { %v586_v32 = vadd.f32 %v1266_v33, %v567_v28 }
 0x216   :  { %v618_v35 = vmul.f32 0.01, %v586_v32  ;;  %vm602_vm11 = vcmp.ge.f32.partialorder %v586_v32, 0.0 }
 0x217   :  { %v380_v20 = vpop.f32.mrf.mxu1 }
 0x218   :  { %v634_v39 = vsel %vm602_vm11, %v586_v32, %v618_v35  ;;  %v381_v48 = vadd.f32 %v1254_v49, %v380_v20 }
 0x219   :  { %v645_v51 = vpack.c.bf16 %v634_v39, %v633_v50 }
 0x21a   :  { %v568_v54 = vmul.f32 %v1263_v29, %v381_v48 }
 0x21c   :  { %v587_v52 = vadd.f32 %v1266_v33, %v568_v54 }
 0x21e   :  { %v619_v58 = vmul.f32 0.01, %v587_v52  ;;  %vm603_vm14 = vcmp.ge.f32.partialorder %v587_v52, 0.0 }
 0x21f   :  { %v382_v30 = vpop.f32.mrf.mxu1 }
 0x220   :  { %v383_v38 = vadd.f32 %v1254_v49, %v382_v30  ;;  %v635_v62 = vsel %vm603_vm14, %v587_v52, %v619_v58 }
 0x221   :  { %731 = vmatmul.bf16.gmra.mxu2 %v643_v15 }
 0x222   :  { %v569_v53 = vmul.f32 %v1263_v29, %v383_v38 }
 0x224   :  { %v588_v55 = vadd.f32 %v1266_v33, %v569_v53 }
 0x226   :  { %v620_v57 = vmul.f32 0.01, %v588_v55  ;;  %vm604_vm13 = vcmp.ge.f32.partialorder %v588_v55, 0.0 }
 0x227   :  { %v385_v37 = vpop.f32.mrf.mxu1 }
 0x228   :  { %v636_v60 = vsel %vm604_vm13, %v588_v55, %v620_v57  ;;  %v386_v61 = vadd.f32 %v1254_v49, %v385_v37  ;;  %v1030_v55 = vld [vmem:[%s1335_s7] ss:$0 sm:$0xff]  ;;  %s1167_s7 = smov [#allocation10]  }
 0x229   :  { %v646_v0 = vpack.c.bf16 %v636_v60, %v635_v62  ;;  %s843_s28 = sshll.u32 %s1167_s7, 4  ;;  %s844_s28 = int_to_ptr.vmem [resolvable:$true] %s843_s28 }
 0x22a   :  { %v570_v2 = vmul.f32 %v1263_v29, %v386_v61 }
 0x22c   :  { %v589_v4 = vadd.f32 %v1266_v33, %v570_v2 }
 0x22e   :  { %v621_v7 = vmul.f32 0.01, %v589_v4  ;;  %vm605_vm0 = vcmp.ge.f32.partialorder %v589_v4, 0.0 }
 0x22f   :  { %v387_v56 = vpop.f32.mrf.mxu1 }
 0x230   :  { %v388_v59 = vadd.f32 %v1254_v49, %v387_v56  ;;  %v637_v11 = vsel %vm605_vm0, %v589_v4, %v621_v7 }
 0x231   :  { %736 = vmatmul.bf16.gmra.mxu2 %v644_v27 }
 0x232   :  { %v571_v1 = vmul.f32 %v1263_v29, %v388_v59 }
 0x234   :  { %v590_v3 = vadd.f32 %v1266_v33, %v571_v1 }
 0x236   :  { %v622_v5 = vmul.f32 0.01, %v590_v3  ;;  %vm606_vm15 = vcmp.ge.f32.partialorder %v590_v3, 0.0 }
 0x237   :  { %v390_v63 = vpop.f32.mrf.mxu1 }
 0x238   :  { %v638_v9 = vsel %vm606_vm15, %v590_v3, %v622_v5  ;;  %v391_v10 = vadd.f32 %v1254_v49, %v390_v63 }
 0x239   :  { %v647_v12 = vpack.c.bf16 %v638_v9, %v637_v11 }
 0x23a   :  { %v572_v14 = vmul.f32 %v1263_v29, %v391_v10 }
 0x23c   :  { %v591_v16 = vadd.f32 %v1266_v33, %v572_v14 }
 0x23e   :  { %v623_v18 = vmul.f32 0.01, %v591_v16  ;;  %vm607_vm2 = vcmp.ge.f32.partialorder %v591_v16, 0.0 }
 0x23f   :  { %v392_v6 = vpop.f32.mrf.mxu1 }
 0x240   :  { %v393_v8 = vadd.f32 %v1254_v49, %v392_v6  ;;  %v639_v20 = vsel %vm607_vm2, %v591_v16, %v623_v18 }
 0x241   :  { %741 = vmatmul.bf16.gmra.mxu2 %v645_v51 }
 0x242   :  { %v573_v13 = vmul.f32 %v1263_v29, %v393_v8 }
 0x244   :  { %v592_v15 = vadd.f32 %v1266_v33, %v573_v13 }
 0x246   :  { %v624_v17 = vmul.f32 0.01, %v592_v15  ;;  %vm608_vm1 = vcmp.ge.f32.partialorder %v592_v15, 0.0 }
 0x248   :  { %v640_v19 = vsel %vm608_vm1, %v592_v15, %v624_v17 }
 0x249   :  { %v648_v21 = vpack.c.bf16 %v640_v19, %v639_v20 }
 0x251   :  { %746 = vmatmul.bf16.gmra.mxu2 %v646_v0 }
 0x261   :  { %751 = vmatmul.bf16.gmra.mxu2 %v647_v12 }
 0x271   :  { %756 = vmatmul.bf16.gmra.mxu2 %v648_v21 }
 0x284   :  { %v722_v49 = vpop.f32.mrf.mxu2 }
 0x28c   :  { %v724_v22 = vpop.f32.mrf.mxu2 }
 0x28d   :  { %v762_v23 = vpack.c.bf16 %v724_v22, %v722_v49 }
 0x294   :  { %v727_v24 = vpop.f32.mrf.mxu2 }
 0x29c   :  { %v729_v25 = vpop.f32.mrf.mxu2 }
 0x29d   :  { %v763_v26 = vpack.c.bf16 %v729_v25, %v727_v24 }
 0x2a4   :  { %v732_v27 = vpop.f32.mrf.mxu2 }
 0x2ac   :  { %v734_v29 = vpop.f32.mrf.mxu2 }
 0x2ad   :  { %v764_v28 = vpack.c.bf16 %v734_v29, %v732_v27 }
 0x2b4   :  { %v737_v30 = vpop.f32.mrf.mxu2 }
 0x2bc   :  { %v739_v31 = vpop.f32.mrf.mxu2 }
 0x2bd   :  { %v765_v33 = vpack.c.bf16 %v739_v31, %v737_v30 }
 0x2c4   :  { %v742_v32 = vpop.f32.mrf.mxu2 }
 0x2cc   :  { %v744_v34 = vpop.f32.mrf.mxu2 }
 0x2cd   :  { %v766_v54 = vpack.c.bf16 %v744_v34, %v742_v32 }
 0x2d4   :  { %v747_v35 = vpop.f32.mrf.mxu2 }
 0x2dc   :  { %v749_v36 = vpop.f32.mrf.mxu2 }
 0x2dd   :  { %v767_v53 = vpack.c.bf16 %v749_v36, %v747_v35 }
 0x2e4   :  { %v752_v37 = vpop.f32.mrf.mxu2 }
 0x2ec   :  { %v754_v38 = vpop.f32.mrf.mxu2 }
 0x2ed   :  { %v768_v51 = vpack.c.bf16 %v754_v38, %v752_v37 }
 0x2f4   :  { %v757_v39 = vpop.f32.mrf.mxu2 }
 0x2fc   :  { %v759_v48 = vpop.f32.mrf.mxu2 }
 0x2fd   :  { %v769_v50 = vpack.c.bf16 %v759_v48, %v757_v39 }
 0x2ff   :  { %774 = vmatpush.bf16.msra.mxu3 %v769_v50 }
 0x303   :  { %775 = vmatpush.bf16.msra.mxu3 %v768_v51 }
 0x307   :  { %776 = vmatpush.bf16.msra.mxu3 %v767_v53 }
 0x30b   :  { %777 = vmatpush.bf16.msra.mxu3 %v766_v54 }
 0x30f   :  { %778 = vmatpush.bf16.msra.mxu3 %v765_v33 }
 0x313   :  { %779 = vmatpush.bf16.msra.mxu3 %v764_v28 }
 0x317   :  { %780 = vmatpush.bf16.msra.mxu3 %v763_v26 }
 0x31b   :  { %781 = vmatpush.bf16.msra.mxu3 %v762_v23 }
 0x31e   :  { %782 = vmatmul.bf16.vlgmr.msra.gmra.mxu3 %v1227_v40 }
 0x32e   :  { %787 = vmatmul.bf16.gmra.mxu3 %v1230_v41 }
 0x33e   :  { %792 = vmatmul.bf16.gmra.mxu3 %v1233_v42 }
 0x34e   :  { %797 = vmatmul.bf16.gmra.mxu3 %v1236_v43 }
 0x35e   :  { %802 = vmatmul.bf16.gmra.mxu3 %v1239_v44 }
 0x36e   :  { %807 = vmatmul.bf16.gmra.mxu3 %v1242_v45 }
 0x37e   :  { %812 = vmatmul.bf16.gmra.mxu3 %v1245_v46 }
 0x38e   :  { %817 = vmatmul.bf16.gmra.mxu3 %v1248_v47 }
 0x3a1   :  { %v783_v56 = vpop.f32.mrf.mxu3 }
 0x3a2   :  { %v784_v40 = vadd.f32 %v1030_v55, %v783_v56 }
 0x3a4   :  { %823 = vst [vmem:[#allocation10] sm:$0xff] %v784_v40 }
 0x3a9   :  { %v785_v41 = vpop.f32.mrf.mxu3 }
 0x3aa   :  { %v786_v52 = vadd.f32 %v1030_v55, %v785_v41 }
 0x3ac   :  { %824 = vst [vmem:[#allocation10 + $0x8] sm:$0xff] %v786_v52 }
 0x3b1   :  { %v788_v42 = vpop.f32.mrf.mxu3 }
 0x3b2   :  { %v789_v43 = vadd.f32 %v1030_v55, %v788_v42 }
 0x3b4   :  { %825 = vst [vmem:[#allocation10 + $0x10] sm:$0xff] %v789_v43 }
 0x3b9   :  { %v790_v44 = vpop.f32.mrf.mxu3 }
 0x3ba   :  { %v791_v57 = vadd.f32 %v1030_v55, %v790_v44 }
 0x3bc   :  { %826 = vst [vmem:[#allocation10 + $0x18] sm:$0xff] %v791_v57 }
 0x3c1   :  { %v793_v45 = vpop.f32.mrf.mxu3 }
 0x3c2   :  { %v794_v46 = vadd.f32 %v1030_v55, %v793_v45 }
 0x3c4   :  { %827 = vst [vmem:[#allocation10 + $0x20] sm:$0xff] %v794_v46 }
 0x3c9   :  { %v795_v47 = vpop.f32.mrf.mxu3 }
 0x3ca   :  { %v796_v58 = vadd.f32 %v1030_v55, %v795_v47 }
 0x3cc   :  { %828 = vst [vmem:[#allocation10 + $0x28] sm:$0xff] %v796_v58 }
 0x3d1   :  { %v798_v59 = vpop.f32.mrf.mxu3 }
 0x3d2   :  { %v799_v60 = vadd.f32 %v1030_v55, %v798_v59 }
 0x3d4   :  { %829 = vst [vmem:[#allocation10 + $0x30] sm:$0xff] %v799_v60 }
 0x3d9   :  { %v800_v61 = vpop.f32.mrf.mxu3 }
 0x3da   :  { %v801_v62 = vadd.f32 %v1030_v55, %v800_v61 }
 0x3dc   :  { %830 = vst [vmem:[#allocation10 + $0x38] sm:$0xff] %v801_v62 }
 0x3e1   :  { %v803_v63 = vpop.f32.mrf.mxu3 }
 0x3e2   :  { %v804_v0 = vadd.f32 %v1030_v55, %v803_v63 }
 0x3e4   :  { %831 = vst [vmem:[#allocation10 + $0x40] sm:$0xff] %v804_v0 }
 0x3e9   :  { %v805_v1 = vpop.f32.mrf.mxu3 }
 0x3ea   :  { %v806_v2 = vadd.f32 %v1030_v55, %v805_v1 }
 0x3ec   :  { %832 = vst [vmem:[#allocation10 + $0x48] sm:$0xff] %v806_v2 }
 0x3f1   :  { %v808_v3 = vpop.f32.mrf.mxu3 }
 0x3f2   :  { %v809_v4 = vadd.f32 %v1030_v55, %v808_v3 }
 0x3f4   :  { %833 = vst [vmem:[#allocation10 + $0x50] sm:$0xff] %v809_v4 }
 0x3f9   :  { %v810_v5 = vpop.f32.mrf.mxu3 }
 0x3fa   :  { %v811_v6 = vadd.f32 %v1030_v55, %v810_v5 }
 0x3fc   :  { %834 = vst [vmem:[#allocation10 + $0x58] sm:$0xff] %v811_v6 }
 0x401   :  { %v813_v7 = vpop.f32.mrf.mxu3 }
 0x402   :  { %v814_v8 = vadd.f32 %v1030_v55, %v813_v7 }
 0x404   :  { %835 = vst [vmem:[#allocation10 + $0x60] sm:$0xff] %v814_v8 }
 0x409   :  { %v815_v9 = vpop.f32.mrf.mxu3 }
 0x40a   :  { %v816_v10 = vadd.f32 %v1030_v55, %v815_v9 }
 0x40c   :  { %836 = vst [vmem:[#allocation10 + $0x68] sm:$0xff] %v816_v10 }
 0x411   :  { %v818_v11 = vpop.f32.mrf.mxu3 }
 0x412   :  { %v819_v12 = vadd.f32 %v1030_v55, %v818_v11 }
 0x414   :  { %837 = vst [vmem:[#allocation10 + $0x70] sm:$0xff] %v819_v12 }
 0x419   :  { %v820_v13 = vpop.f32.mrf.mxu3 }
 0x41a   :  { %v821_v14 = vadd.f32 %v1030_v55, %v820_v13 }
 0x41c   :  { %838 = vst [vmem:[#allocation10 + $0x78] sm:$0xff] %v821_v14 }
 0x41d   :  { %851 = dma.vmem_to_hbm [thread:$0]  %s844_s28, 2048, %s846_s9, [#allocation4], %s1168_s10, %s1168_s10, %s1169_s11  }
 0x41e   :  { %1159 = dma.done.wait [#allocation4], 2048  }
 0x41f   :  { %1160 = vsyncadd [#allocation4], 4294965248 }
 0x420   :  { %856 = vsyncpa [#allocation3], 1 }
 0x421   :  { %857 = vsyncpa [#allocation6], 1 }
 0x422   :  { %858 = vsyncpa [#allocation9], 1 }
 0x423   :  { %859 = vsyncpa [#allocation4], 1 }

</bundles_post_ra>
